<compile_context>
chip_gen: v7x
topology: tpu7x:2x2x1
jax: 0.10.0
libtpu: 0.0.40
codegen_flags: <defaults>
</compile_context>

<pallas_src>
import functools

import jax
import jax.numpy as jnp
import numpy as np
from jax import lax
from jax.experimental import pallas as pl
from jax.experimental.pallas import tpu as pltpu


# ----------------------------- Pallas kernel -------------------------------
def _conv_bn_silu_kernel(p_ref, w_ref, shift_ref, o_ref):
    # Full contraction dim in one block -> single MXU dot, no accumulator
    # scratch, no pl.when init/finalize machinery.
    y = jnp.dot(p_ref[...], w_ref[...], preferred_element_type=jnp.float32)
    # BN scale already folded into the weight columns; only the shift remains.
    y = y + shift_ref[...]
    # SiLU: y * sigmoid(y) (exact; epilogue runs once per block).
    sig = 1.0 / (1.0 + jnp.exp(-y))
    o_ref[...] = (y * sig).astype(o_ref.dtype)


def _pallas_conv_bn_silu(patches, w_mat, shift, *, tm):
    """patches: (Mp, Kp) bf16, w_mat: (Kp, Cp) bf16, shift: (1, Cp) f32.
    Mp % tm == 0, Cp % 128 == 0, Kp is the full contraction dim.
    Returns (Mp, Cp) bf16."""
    Mp, Kp = patches.shape
    Kp2, Cp = w_mat.shape
    assert Kp == Kp2 and shift.shape == (1, Cp)
    assert Mp % tm == 0 and Cp % 128 == 0 and tm % 8 == 0

    grid = (Mp // tm,)
    return pl.pallas_call(
        _conv_bn_silu_kernel,
        out_shape=jax.ShapeDtypeStruct((Mp, Cp), jnp.bfloat16),
        grid_spec=pltpu.PrefetchScalarGridSpec(
            num_scalar_prefetch=0,
            grid=grid,
            in_specs=[
                # Streamed patch tiles (only input that varies across the grid).
                pl.BlockSpec((tm, Kp), lambda i: (i, 0)),
                # Folded weight matrix: VMEM-resident (constant block index).
                pl.BlockSpec((Kp, Cp), lambda i: (0, 0)),
                # BN shift row: VMEM-resident.
                pl.BlockSpec((1, Cp), lambda i: (0, 0)),
            ],
            out_specs=pl.BlockSpec((tm, Cp), lambda i: (i, 0)),
        ),
        compiler_params=pltpu.CompilerParams(
            dimension_semantics=("parallel",),
        ),
    )(patches, w_mat, shift)


# ------------------------------ JAX glue ------------------------------------
def _pad_to(x, mult, axis):
    """Zero-pad `axis` of x up to the next multiple of `mult`."""
    size = x.shape[axis]
    pad = (-size) % mult
    if pad == 0:
        return x
    widths = [(0, 0)] * x.ndim
    widths[axis] = (0, pad)
    return jnp.pad(x, widths)


def _im2col(x_nchw, kh, kw, stride, pad):
    """Extract conv patches. Returns (N*OH*OW, Cin*KH*KW) with (C, KH, KW)
    ordering along K to match PyTorch's weight layout (Cout, Cin, KH, KW)."""
    N, C, H, W = x_nchw.shape
    xp = jnp.pad(x_nchw, ((0, 0), (0, 0), (pad, pad), (pad, pad)))
    OH = (H + 2 * pad - kh) // stride + 1
    OW = (W + 2 * pad - kw) // stride + 1
    cols = []
    for i in range(kh):
        for j in range(kw):
            cols.append(xp[:, :, i:i + stride * OH:stride, j:j + stride * OW:stride])
    # (KH*KW, N, C, OH, OW) -> (N, OH, OW, C, KH, KW)
    patches = jnp.stack(cols, axis=0).reshape(kh, kw, N, C, OH, OW)
    patches = patches.transpose(2, 4, 5, 3, 0, 1)
    return patches.reshape(N * OH * OW, C * kh * kw), OH, OW


def conv_module_forward(x_nchw, params, *, kernel_size, stride, padding,
                        eps=1e-5, tm=256, cout_lanes=128, k_sublane=16):
    """ConvModule forward: Conv2d (bias=False) -> BatchNorm2d (eval) -> SiLU.
    x_nchw: (N, Cin, H, W).  Returns (N, Cout, OH, OW) in float32.

    tm=256 keeps >=2 parallel M blocks at these shapes (both v7x TCs busy);
    for production channel counts raise tm and let Cout occupy real lanes."""
    w, gamma, beta, run_mean, run_var = (
        params["w"], params["gamma"], params["beta"],
        params["running_mean"], params["running_var"],
    )
    Cout, Cin, KH, KW = w.shape
    N = x_nchw.shape[0]

    patches, OH, OW = _im2col(x_nchw, KH, KW, stride, padding)       # (M, K)
    M, K = patches.shape

    # Fold BN (inference / running stats) into a per-channel affine; fold the
    # scale into the weight columns in f32, then cast to bf16.
    inv_std = gamma / jnp.sqrt(run_var + eps)
    w_mat = w.reshape(Cout, K).T * inv_std[None, :]                  # (K, Cout)
    shift = (beta - run_mean * inv_std).reshape(1, Cout)

    # Cast to bf16 BEFORE padding (half the pad/copy bytes), then pad:
    #   K    -> multiple of the bf16 sublane count (16), NOT 128
    #   Cout -> multiple of 128 (lane-dense, unmasked stores)
    #   M    -> multiple of tm
    patches_bf = patches.astype(jnp.bfloat16)
    w_bf = w_mat.astype(jnp.bfloat16)
    patches_p = _pad_to(_pad_to(patches_bf, k_sublane, 1), tm, 0)
    w_p = _pad_to(_pad_to(w_bf, k_sublane, 0), cout_lanes, 1)
    shift_p = _pad_to(shift.astype(jnp.float32), cout_lanes, 1)

    out_p = _pallas_conv_bn_silu(patches_p, w_p, shift_p, tm=tm)     # bf16
    out_flat = out_p[:M, :Cout].astype(jnp.float32)

    # (M, Cout) -> (N, OH, OW, Cout) -> NCHW (module-level layout parity).
    return out_flat.reshape(N, OH, OW, Cout).transpose(0, 3, 1, 2)


# ------------------------------ Reference -----------------------------------
def _reference(x_nchw, params, *, stride, padding, eps=1e-5,
               conv_dtype=jnp.float32):
    """Conv2d -> BatchNorm2d(eval) -> SiLU.  `conv_dtype` lets us build a
    precision-matched (bf16 conv, f32 accumulate) reference."""
    w = params["w"]
    y = lax.conv_general_dilated(
        x_nchw.astype(conv_dtype), w.astype(conv_dtype),
        window_strides=(stride, stride),
        padding=[(padding, padding), (padding, padding)],
        dimension_numbers=("NCHW", "OIHW", "NCHW"),
        preferred_element_type=jnp.float32)
    g = params["gamma"][None, :, None, None]
    b = params["beta"][None, :, None, None]
    m = params["running_mean"][None, :, None, None]
    v = params["running_var"][None, :, None, None]
    y = g * (y - m) / jnp.sqrt(v + eps) + b
    return y * jax.nn.sigmoid(y)


# -------------------------------- Main ---------------------------------------
if __name__ == "__main__":
    # ConvModule(in_channels=4, out_channels=8, kernel_size=3, stride=1,
    #            padding=1, norm_cfg={'type': 'BN'}, act_cfg={'type': 'SiLU'})
    in_channels, out_channels, kernel_size, stride, padding = 4, 8, 3, 1, 1

    key = jax.random.PRNGKey(0)
    kx, kw, kg, kb, km, kv = jax.random.split(key, 6)

    x = jax.random.normal(kx, (2, in_channels, 16, 16), dtype=jnp.float32)

    params = {
        "w": jax.random.normal(
            kw, (out_channels, in_channels, kernel_size, kernel_size),
            dtype=jnp.float32) * 0.1,
        "gamma": jax.random.normal(kg, (out_channels,), dtype=jnp.float32) * 0.1 + 1.0,
        "beta": jax.random.normal(kb, (out_channels,), dtype=jnp.float32) * 0.1,
        "running_mean": jax.random.normal(km, (out_channels,), dtype=jnp.float32) * 0.1,
        "running_var": jnp.abs(jax.random.normal(kv, (out_channels,), dtype=jnp.float32)) * 0.1 + 1.0,
    }

    fwd = functools.partial(conv_module_forward, kernel_size=kernel_size,
                            stride=stride, padding=padding)
    out = jax.block_until_ready(fwd(x, params))

    # Precision-matched reference (bf16 conv inputs, f32 accumulation).
    ref_bf16 = _reference(x, params, stride=stride, padding=padding,
                          conv_dtype=jnp.bfloat16)
    np.testing.assert_allclose(np.asarray(out), np.asarray(ref_bf16),
                               rtol=1e-2, atol=2e-2)

    # Full-f32 module semantics (looser tolerance: bf16 matmul inputs/output).
    ref_f32 = _reference(x, params, stride=stride, padding=padding,
                         conv_dtype=jnp.float32)
    np.testing.assert_allclose(np.asarray(out), np.asarray(ref_f32),
                               rtol=2e-2, atol=2e-2)

    print("KERNEL_OK")
</pallas_src>

<mosaic_0001>
module attributes {stable_mosaic.version = 11 : i64} {
  func.func @_conv_bn_silu_kernel(%arg0: i32, %arg1: memref<256x48xbf16, #tpu.memory_space<vmem>>, %arg2: memref<48x128xbf16, #tpu.memory_space<vmem>>, %arg3: memref<1x128xf32, #tpu.memory_space<vmem>>, %arg4: memref<256x128xbf16, #tpu.memory_space<vmem>>) attributes {dimension_semantics = [#tpu.dimension_semantics<parallel>], iteration_bounds = array<i64: 2>, scalar_prefetch = 0 : i64, scratch_operands = 0 : i64, tpu.core_type = #tpu.core_type<tc>, window_params = [{transform_indices = @transform_0, window_bounds = array<i64: 256, 48>}, {pipeline_mode = #tpu.pipeline_mode<synchronous>, transform_indices = @transform_1, window_bounds = array<i64: 48, 128>}, {pipeline_mode = #tpu.pipeline_mode<synchronous>, transform_indices = @transform_2, window_bounds = array<i64: 1, 128>}, {transform_indices = @transform_3, window_bounds = array<i64: 256, 128>}]} {
    %c0 = arith.constant 0 : index
    %c0_0 = arith.constant 0 : index
    %0 = vector.load %arg1[%c0, %c0_0] : memref<256x48xbf16, #tpu.memory_space<vmem>>, vector<256x48xbf16>
    %c0_1 = arith.constant 0 : index
    %c0_2 = arith.constant 0 : index
    %1 = vector.load %arg2[%c0_1, %c0_2] : memref<48x128xbf16, #tpu.memory_space<vmem>>, vector<48x128xbf16>
    %cst = arith.constant dense<0.000000e+00> : vector<256x128xf32>
    %2 = tpu.matmul %0, %1, %cst {dimension_numbers = #tpu.dot_dimension_numbers<[1], [0], [0], [1], [0, 0, 1, 1], [], []>} : vector<256x48xbf16>, vector<48x128xbf16>, vector<256x128xf32> -> vector<256x128xf32>
    %c0_3 = arith.constant 0 : index
    %c0_4 = arith.constant 0 : index
    %3 = vector.load %arg3[%c0_3, %c0_4] : memref<1x128xf32, #tpu.memory_space<vmem>>, vector<1x128xf32>
    %4 = vector.broadcast %3 : vector<1x128xf32> to vector<256x128xf32>
    %5 = arith.addf %2, %4 : vector<256x128xf32>
    %cst_5 = arith.constant 0.000000e+00 : f32
    %6 = vector.broadcast %cst_5 : f32 to vector<256x128xf32>
    %7 = arith.subf %6, %5 : vector<256x128xf32>
    %8 = math.exp %7 : vector<256x128xf32>
    %cst_6 = arith.constant 1.000000e+00 : f32
    %9 = vector.broadcast %cst_6 : f32 to vector<256x128xf32>
    %10 = arith.addf %9, %8 : vector<256x128xf32>
    %cst_7 = arith.constant 1.000000e+00 : f32
    %11 = vector.broadcast %cst_7 : f32 to vector<256x128xf32>
    %12 = arith.divf %11, %10 : vector<256x128xf32>
    %13 = arith.mulf %5, %12 : vector<256x128xf32>
    %14 = arith.truncf %13 : vector<256x128xf32> to vector<256x128xbf16>
    %c0_8 = arith.constant 0 : index
    %c0_9 = arith.constant 0 : index
    %15 = vector.load %arg4[%c0_8, %c0_9] : memref<256x128xbf16, #tpu.memory_space<vmem>>, vector<256x128xbf16>
    tpu.vector_store %arg4[%c0_8, %c0_9], %14 {strides = array<i32>} : memref<256x128xbf16, #tpu.memory_space<vmem>>, vector<256x128xbf16>,
    return
  }
  func.func @transform_0(%arg0: i32) -> (i32, i32) {
    %c0_i32 = arith.constant 0 : i32
    %c0_i32_0 = arith.constant 0 : i32
    return %arg0, %c0_i32 : i32, i32
  }
  func.func @transform_1(%arg0: i32) -> (i32, i32) {
    %c0_i32 = arith.constant 0 : i32
    %c0_i32_0 = arith.constant 0 : i32
    %c0_i32_1 = arith.constant 0 : i32
    return %c0_i32, %c0_i32_0 : i32, i32
  }
  func.func @transform_2(%arg0: i32) -> (i32, i32) {
    %c0_i32 = arith.constant 0 : i32
    %c0_i32_0 = arith.constant 0 : i32
    %c0_i32_1 = arith.constant 0 : i32
    return %c0_i32, %c0_i32_0 : i32, i32
  }
  func.func @transform_3(%arg0: i32) -> (i32, i32) {
    %c0_i32 = arith.constant 0 : i32
    %c0_i32_0 = arith.constant 0 : i32
    return %arg0, %c0_i32 : i32, i32
  }
}

</mosaic_0001>

<bundles_post_ra>
// kernel: tpu_custom_call.1
= control target key start
LH: loop header
LB: loop body
LE: loop exit
PB: predicated region body
PF: predicated region fallthrough
CT: control target
= control target key end

     0   :  { %8 = vsyncpa [#allocation3], 0  ;;  %s1898_s0 = inlined_call_operand.vmem [shape: bf16[512,48], index: 0, kind: input, shape index: {}]   ;;  %s1899_s1 = inlined_call_operand.vmem [shape: bf16[48,128], index: 1, kind: input, shape index: {}]   ;;  %s1900_s2 = inlined_call_operand.vmem [shape: f32[1,128], index: 2, kind: input, shape index: {}]   ;;  %s1901_s3 = inlined_call_operand.hbm [shape: bf16[512,128], index: 3, kind: output, shape index: {}]  }
   0x1   :  { %10 = vsyncpa [#allocation3 + $0x1], 0  ;;  %s1532_s12 = smov 0   ;;  %s1534_s13 = smov 0  }
   0x2   :  { %s1536_s14 = smov 0   ;;  %s1538_s15 = smov 0  }
   0x3 LB: > { %s1553_s16 = sadd.s32 4294967295, %s1507_s15   ;;  %s986_s17 = sadd.s32 4294967294, %s1507_s15   ;;  %s1507_s15 = sphi %s1538_s15, %s1907_s15   ;;  %s1503_s14 = sphi %s1536_s14, %s1906_s14   ;;  %s1499_s13 = sphi %s1534_s13, %s1905_s13   ;;  %s1495_s12 = sphi %s1532_s12, %s1904_s12  }
   0x4   : > { %s1557_s18 = sadd.s32 1, %s1507_s15   ;;  %s91_s19 = sadd.s32 1, %s1503_s14 }
   0x5   : > { %s88_s20 = ssub.s32 %s1507_s15, %s1557_s18  ;;  %p101_p0 = scmp.ne.s32.totalorder %s1503_s14, %s1499_s13 }
   0x6   : > { %p89_p1 = scmp.eq.s32.totalorder %s88_s20, 0  ;;  %p102_p2 = scmp.eq.s32.totalorder %s1553_s16, 1 }
   0x7   : > { %p107_p3 = scmp.ne.s32.totalorder %s1499_s13, %s1495_s12  ;;  %p108_p4 = scmp.eq.s32.totalorder %s986_s17, 1 }
   0x8   : > { %s1568_s21 = scalar_select %p89_p1, %s1503_s14, %s91_s19  }
   0x9   : > { %p1570_p5 = por %p102_p2, %p101_p0  ;;  %p1574_p6 = por %p108_p4, %p107_p3 }
   0xa   : > { %p989_p7 = scmp.ge.s32.totalorder %s1507_s15, 1  ;;  %p141_p8 = scmp.lt.s32.totalorder %s1507_s15, 3 }
   0xc   : > { %p142_p9 = pnand %p989_p7, %p141_p8 }
   0xd   : > { %v1298_v0 = vld [vmem:[%s1899_s1] sm:$0xff] (!%p142_p9)   ;;  %s991_s26 = sshll.u32 (!%p142_p9), %s1553_s16, 5  ;;  %v1299_v1 = vld [vmem:[%s1899_s1 + $0x8] sm:$0xff] (!%p142_p9)   ;;  %v1300_v2 = vld [vmem:[%s1899_s1 + $0x10] sm:$0xff] (!%p142_p9)   ;;  %vm316_vm0 = vcmask (!%p142_p9), 392192   ;;  %s162_s10 = sand.u32 (!%p142_p9), 1, %s1499_s13  }
   0xe   : > { %145 = sbr.rel (%p142_p9) target bundleno = 344 (0x158), region = 32  ;;  %p166_p10 = scmp.lt.s32.totalorder (!%p142_p9), %s991_s26, 63  ;;  %1213 = vmatprep.subr.bf16.mxu0 (!%p142_p9), %v1298_v0  ;;  %1251 = vmatprep.subr.bf16.mxu1 (!%p142_p9), %v1298_v0  ;;  %v1630_v19 = vld [vmem:[%s1900_s2] ss:$0 sm:$0xff] (!%p142_p9) }
   0xf   : > { %1214 = vmatpush3.bf16.msra.mxu0 (!%p142_p9), %v1298_v0  ;;  %1254 = vmatpush3.bf16.msra.mxu1 (!%p142_p9), %v1298_v0  ;;  %s1744_s11 = sshll.u32 (!%p142_p9), %s162_s10, 7  ;;  %s1098_s19 = sshll.u32 (!%p142_p9), %s1553_s16, 11 }
  0x10   : > { %1215 = vmatprep.subr.bf16.mxu0 (!%p142_p9), %v1299_v1  ;;  %1252 = vmatprep.subr.bf16.mxu1 (!%p142_p9), %v1299_v1  ;;  %s1767_s17 = scalar_lea.vmem (!%p142_p9), [#allocation2], %s1744_s11  ;;  %s1848_s16 = scalar_lea.hbm (!%p142_p9), %s1901_s3, %s1098_s19 }
  0x11   : > { %s924_s20 = sshll.u32 (!%p142_p9), %s1767_s17, 4  ;;  %s1509_s28 = smov (!%p142_p9), [#allocation2]   ;;  %s1850_s20 = int_to_ptr.vmem [resolvable:$true] %s924_s20 }
  0x12   : > { %s1445_s27 = scalar_lea.vmem (!%p142_p9), %s1850_s20, 2048  ;;  %s1449_s29 = sshll.u32 (!%p142_p9), %s1509_s28, 4  ;;  %s1450_s29 = int_to_ptr.vmem [resolvable:$false] %s1449_s29 }
  0x13   : > { %1216 = vmatpush3.bf16.msra.mxu0 (!%p142_p9), %v1299_v1  ;;  %1255 = vmatpush3.bf16.msra.mxu1 (!%p142_p9), %v1299_v1  ;;  %p1446_p11 = scmp.ne.s32.totalorder (!%p142_p9), %s1850_s20, %s1445_s27  ;;  %s1451_s30 = scalar_lea.vmem (!%p142_p9), %s1450_s29, 4096 }
  0x14   : > { %1217 = vmatprep.subr.bf16.mxu0 (!%p142_p9), %v1300_v2  ;;  %1253 = vmatprep.subr.bf16.mxu1 (!%p142_p9), %v1300_v2  ;;  %p1452_p0 = scmp.lt.s32.totalorder (!%p142_p9), %s1850_s20, %s1450_s29  ;;  %p1453_p1 = scmp.lt.s32.totalorder (!%p142_p9), %s1451_s30, %s1445_s27 }
  0x15   : > { %s1909_s26 = smov (!%p166_p10, %s991_s26), 63  ;;  %p1447_p12 = pnand %p1446_p11, %p1570_p5 }
  0x16   : > { %s992_s4 = sshll.u32 %s1909_s26, 2  ;;  %s1857_s26 = scalar_lea.sflag [#allocation3], %s162_s10 }
  0x17   : > { %s1593_s7 = scalar_lea.vmem %s1898_s0, %s992_s4  ;;  %1218 = vmatpush3.bf16.msra.mxu0 %v1300_v2  ;;  %1256 = vmatpush3.bf16.msra.mxu1 %v1300_v2  ;;  %p1448_p13 = pneg %p1447_p12 }
  0x18   : > { %v1301_v3 = vld [vmem:[%s1593_s7] sm:$0xff]   ;;  %v1303_v5 = vld [vmem:[%s1593_s7 + $0x8] sm:$0xff]   ;;  %v1305_v7 = vld [vmem:[%s1593_s7 + $0x10] sm:$0xff]   ;;  %p1454_p2 = por %p1453_p1, %p1452_p0 }
  0x19   : > { %v1302_v4 = vld [vmem:[%s1593_s7 + $0x40] sm:$0xff]   ;;  %1219 = vmatprep.mubr.msk.bf16.mxu0 %vm316_vm0, %v1301_v3  ;;  %v1304_v6 = vld [vmem:[%s1593_s7 + $0x48] sm:$0xff]   ;;  %v1306_v8 = vld [vmem:[%s1593_s7 + $0x50] sm:$0xff]  }
  0x1a   : > { %1235 = vmatprep.mubr.msk.bf16.mxu1 %vm316_vm0, %v1302_v4  ;;  %1220 = vmatmul.mubr.msk.bf16.vlgmr.msra.gmra.mrb[0].mxu0 %vm316_vm0, %v1303_v5  ;;  %v1307_v9 = vld [vmem:[%s1593_s7 + $0x18] sm:$0xff]   ;;  %v1309_v11 = vld [vmem:[%s1593_s7 + $0x20] sm:$0xff]   ;;  %v1311_v13 = vld [vmem:[%s1593_s7 + $0x28] sm:$0xff]   ;;  %p1455_p3 = pnand %p1454_p2, %p1448_p13 }
  0x1b   : > { %1236 = vmatmul.mubr.msk.bf16.vlgmr.msra.gmra.mrb[0].mxu1 %vm316_vm0, %v1304_v6  ;;  %1223 = vmatprep.mubr.msk.bf16.mxu0 %vm316_vm0, %v1305_v7  ;;  %v1308_v10 = vld [vmem:[%s1593_s7 + $0x58] sm:$0xff]   ;;  %v1310_v12 = vld [vmem:[%s1593_s7 + $0x60] sm:$0xff]   ;;  %v1312_v14 = vld [vmem:[%s1593_s7 + $0x68] sm:$0xff]  }
  0x1c   : > { %1239 = vmatprep.mubr.msk.bf16.mxu1 %vm316_vm0, %v1306_v8  ;;  %v1313_v15 = vld [vmem:[%s1593_s7 + $0x30] sm:$0xff]   ;;  %v1315_v17 = vld [vmem:[%s1593_s7 + $0x38] sm:$0xff]  }
  0x1d   : > { %v1314_v16 = vld [vmem:[%s1593_s7 + $0x70] sm:$0xff]   ;;  %v1316_v18 = vld [vmem:[%s1593_s7 + $0x78] sm:$0xff]  }
  0x22   : > { %1224 = vmatmul.mubr.msk.bf16.gmra.mrb[4].mxu0 %vm316_vm0, %v1307_v9 }
  0x23   : > { %1240 = vmatmul.mubr.msk.bf16.gmra.mrb[4].mxu1 %vm316_vm0, %v1308_v10  ;;  %1227 = vmatprep.mubr.msk.bf16.mxu0 %vm316_vm0, %v1309_v11 }
  0x24   : > { %1243 = vmatprep.mubr.msk.bf16.mxu1 %vm316_vm0, %v1310_v12 }
  0x2a   : > { %1228 = vmatmul.mubr.msk.bf16.gmra.mrb[8].mxu0 %vm316_vm0, %v1311_v13 }
  0x2b   : > { %1244 = vmatmul.mubr.msk.bf16.gmra.mrb[8].mxu1 %vm316_vm0, %v1312_v14  ;;  %1231 = vmatprep.mubr.msk.bf16.mxu0 %vm316_vm0, %v1313_v15 }
  0x2c   : > { %1247 = vmatprep.mubr.msk.bf16.mxu1 %vm316_vm0, %v1314_v16 }
  0x32   : > { %1232 = vmatmul.mubr.msk.bf16.gmra.mrb[12].mxu0 %vm316_vm0, %v1315_v17 }
  0x33   : > { %1248 = vmatmul.mubr.msk.bf16.gmra.mrb[12].mxu1 %vm316_vm0, %v1316_v18 }
  0xed   : > { %v1221_v20 = vpop.f32.mrb[0].mxu0 }
  0xee   : > { %v1237_v21 = vpop.f32.mrb[0].mxu1  ;;  %v1633_v22 = vadd.f32 %v1221_v20, %v1630_v19  ;;  %v399_v24 = vpop.f32.mrb[1].mxu0 }
  0xef   : > { %v1636_v23 = vadd.f32 %v1237_v21, %v1630_v19  ;;  %v463_v25 = vpop.f32.mrb[1].mxu1  ;;  %v1639_v26 = vadd.f32 %v1630_v19, %v399_v24  ;;  %v1222_v28 = vpop.f32.mrb[2].mxu0 }
  0xf0   : > { %v1642_v27 = vadd.f32 %v1630_v19, %v463_v25  ;;  %v1238_v29 = vpop.f32.mrb[2].mxu1  ;;  %v528_v30 = vsub.f32 0.0, %v1633_v22  ;;  %v1647_v32 = vadd.f32 %v1222_v28, %v1630_v19  ;;  %v402_v34 = vpop.f32.mrb[3].mxu0 }
  0xf1   : > { %v544_v31 = vsub.f32 0.0, %v1636_v23  ;;  %v1650_v33 = vadd.f32 %v1238_v29, %v1630_v19  ;;  %v466_v35 = vpop.f32.mrb[3].mxu1  ;;  %v526_v36 = vsub.f32 0.0, %v1639_v26  ;;  %v1655_v38 = vadd.f32 %v1630_v19, %v402_v34 }
  0xf2   : > { %v542_v37 = vsub.f32 0.0, %v1642_v27  ;;  %v1658_v39 = vadd.f32 %v1630_v19, %v466_v35  ;;  %v562_v40 = vmul.f32 1.442695, %v528_v30  ;;  %v529_v42 = vsub.f32 0.0, %v1647_v32 }
  0xf3   : > { %v594_v41 = vmul.f32 1.442695, %v544_v31  ;;  %v545_v43 = vsub.f32 0.0, %v1650_v33  ;;  %v558_v44 = vmul.f32 1.442695, %v526_v36  ;;  %v527_v46 = vsub.f32 0.0, %v1655_v38 }
  0xf4   : > { %v590_v45 = vmul.f32 1.442695, %v542_v37  ;;  %v543_v47 = vsub.f32 0.0, %v1658_v39  ;;  %1317 = vpow2.f32 %v562_v40  ;;  %v564_v48 = vmul.f32 1.442695, %v529_v42 }
  0xf5   : > { %1319 = vpow2.f32 %v594_v41  ;;  %v596_v49 = vmul.f32 1.442695, %v545_v43  ;;  %v1225_v50 = vpop.f32.mrb[4].mxu0  ;;  %v560_v52 = vmul.f32 1.442695, %v527_v46 }
  0xf6   : > { %v1241_v51 = vpop.f32.mrb[4].mxu1  ;;  %1321 = vpow2.f32 %v558_v44  ;;  %v1665_v53 = vadd.f32 %v1225_v50, %v1630_v19  ;;  %v415_v55 = vpop.f32.mrb[5].mxu0  ;;  %v592_v57 = vmul.f32 1.442695, %v543_v47 }
  0xf7   : > { %v1668_v54 = vadd.f32 %v1241_v51, %v1630_v19  ;;  %v479_v56 = vpop.f32.mrb[5].mxu1  ;;  %1323 = vpow2.f32 %v590_v45  ;;  %v1671_v58 = vadd.f32 %v1630_v19, %v415_v55  ;;  %v1226_v60 = vpop.f32.mrb[6].mxu0 }
  0xf8   : > { %v1674_v59 = vadd.f32 %v1630_v19, %v479_v56  ;;  %v1242_v61 = vpop.f32.mrb[6].mxu1  ;;  %1325 = vpow2.f32 %v564_v48  ;;  %v532_v62 = vsub.f32 0.0, %v1665_v53  ;;  %v1679_v0 = vadd.f32 %v1226_v60, %v1630_v19  ;;  %v418_v1 = vpop.f32.mrb[7].mxu0 }
  0xf9   : > { %v548_v63 = vsub.f32 0.0, %v1668_v54  ;;  %v482_v2 = vpop.f32.mrb[7].mxu1  ;;  %1327 = vpow2.f32 %v596_v49  ;;  %v530_v3 = vsub.f32 0.0, %v1671_v58  ;;  %v1684_v5 = vadd.f32 %v1242_v61, %v1630_v19 }
  0xfa   : > { %v546_v4 = vsub.f32 0.0, %v1674_v59  ;;  %1329 = vpow2.f32 %v560_v52  ;;  %v570_v6 = vmul.f32 1.442695, %v532_v62  ;;  %v533_v8 = vsub.f32 0.0, %v1679_v0 }
  0xfb   : > { %v602_v7 = vmul.f32 1.442695, %v548_v63  ;;  %1331 = vpow2.f32 %v592_v57  ;;  %v566_v9 = vmul.f32 1.442695, %v530_v3  ;;  %v549_v15 = vsub.f32 0.0, %v1684_v5 }
  0xfc   : > { %v598_v10 = vmul.f32 1.442695, %v546_v4  ;;  %1333 = vpow2.f32 %v570_v6  ;;  %v572_v11 = vmul.f32 1.442695, %v533_v8  ;;  %v1689_v21 = vadd.f32 %v1630_v19, %v418_v1 }
  0xfd   : > { %1335 = vpow2.f32 %v602_v7  ;;  %v1229_v12 = vpop.f32.mrb[8].mxu0  ;;  %v1692_v24 = vadd.f32 %v1630_v19, %v482_v2  ;;  %v1694_v41 = vmul.f32 1.442695, %v549_v15 }
  0xfe   : > { %v1245_v13 = vpop.f32.mrb[8].mxu1  ;;  %v1318_v14 = vpop.eup %1317  ;;  %1337 = vpow2.f32 %v566_v9  ;;  %v531_v44 = vsub.f32 0.0, %v1689_v21  ;;  %v1699_v48 = vadd.f32 %v1229_v12, %v1630_v19 }
  0xff   : > { %v431_v16 = vpop.f32.mrb[9].mxu0  ;;  %v495_v17 = vpop.f32.mrb[9].mxu1  ;;  %v624_v20 = vadd.f32 1.0, %v1318_v14  ;;  %1339 = vpow2.f32 %v598_v10  ;;  %v547_v45 = vsub.f32 0.0, %v1692_v24  ;;  %v1702_v49 = vadd.f32 %v1245_v13, %v1630_v19 }
 0x100   : > { %v1320_v18 = vpop.eup %1319  ;;  %v1230_v25 = vpop.f32.mrb[10].mxu0  ;;  %1341 = vpow2.f32 %v572_v11  ;;  %v1705_v52 = vadd.f32 %v1630_v19, %v431_v16  ;;  %v1708_v55 = vadd.f32 %v1630_v19, %v495_v17  ;;  %v568_v6 = vmul.f32 1.442695, %v531_v44 }
 0x101   : > { %v1246_v28 = vpop.f32.mrb[10].mxu1  ;;  %v1322_v29 = vpop.eup %1321  ;;  %v640_v30 = vadd.f32 1.0, %v1320_v18  ;;  %1343 = vrcp.f32 %v624_v20  ;;  %v1711_v62 = vadd.f32 %v1230_v25, %v1630_v19  ;;  %v536_v12 = vsub.f32 0.0, %v1699_v48 }
 0x102   : > { %v434_v31 = vpop.f32.mrb[11].mxu0  ;;  %v1324_v34 = vpop.eup %1323  ;;  %v622_v35 = vadd.f32 1.0, %v1322_v29  ;;  %v1714_v63 = vadd.f32 %v1246_v28, %v1630_v19  ;;  %v552_v13 = vsub.f32 0.0, %v1702_v49  ;;  %v534_v18 = vsub.f32 0.0, %v1705_v52 }
 0x103   : > { %v498_v36 = vpop.f32.mrb[11].mxu1  ;;  %v1326_v37 = vpop.eup %1325  ;;  %1345 = vrcp.f32 %v640_v30  ;;  %v638_v40 = vadd.f32 1.0, %v1324_v34  ;;  %v1721_v7 = vadd.f32 %v1630_v19, %v434_v31  ;;  %v550_v20 = vsub.f32 0.0, %v1708_v55 }
 0x104   : > { %v1328_v42 = vpop.eup %1327  ;;  %1347 = vrcp.f32 %v622_v35  ;;  %v625_v43 = vadd.f32 1.0, %v1326_v37  ;;  %v537_v29 = vsub.f32 0.0, %v1711_v62  ;;  %v553_v30 = vsub.f32 0.0, %v1714_v63 }
 0x105   : > { %v1330_v46 = vpop.eup %1329  ;;  %1349 = vrcp.f32 %v638_v40  ;;  %v641_v47 = vadd.f32 1.0, %v1328_v42  ;;  %v1233_v56 = vpop.f32.mrb[12].mxu0  ;;  %v535_v35 = vsub.f32 0.0, %v1721_v7  ;;  %v1740_v37 = vadd.f32 %v1630_v19, %v498_v36 }
 0x106   : > { %v1332_v50 = vpop.eup %1331  ;;  %1351 = vrcp.f32 %v625_v43  ;;  %v623_v51 = vadd.f32 1.0, %v1330_v46  ;;  %v1249_v57 = vpop.f32.mrb[12].mxu1  ;;  %v600_v42 = vmul.f32 1.442695, %v547_v45  ;;  %v578_v43 = vmul.f32 1.442695, %v536_v12 }
 0x107   : > { %v1334_v60 = vpop.eup %1333  ;;  %1353 = vrcp.f32 %v641_v47  ;;  %v639_v61 = vadd.f32 1.0, %v1332_v50  ;;  %v1716_v1 = vpop.f32.mrb[13].mxu0  ;;  %v610_v46 = vmul.f32 1.442695, %v552_v13  ;;  %v1747_v47 = vadd.f32 %v1233_v56, %v1630_v19 }
 0x108   : > { %v1718_v2 = vpop.f32.mrb[13].mxu1  ;;  %v1336_v3 = vpop.eup %1335  ;;  %1355 = vrcp.f32 %v623_v51  ;;  %v628_v4 = vadd.f32 1.0, %v1334_v60  ;;  %v1750_v50 = vadd.f32 %v1249_v57, %v1630_v19  ;;  %v574_v36 = vmul.f32 1.442695, %v534_v18 }
 0x109   : > { %v1723_v8 = vpop.f32.mrb[14].mxu0  ;;  %v1725_v9 = vpop.f32.mrb[14].mxu1  ;;  %1357 = vrcp.f32 %v639_v61  ;;  %v644_v11 = vadd.f32 1.0, %v1336_v3  ;;  %v606_v60 = vmul.f32 1.442695, %v550_v20 }
 0x10a   : > { %v1338_v10 = vpop.eup %1337  ;;  %v1729_v14 = vpop.f32.mrb[15].mxu0  ;;  %1359 = vrcp.f32 %v628_v4  ;;  %v580_v61 = vmul.f32 1.442695, %v537_v29  ;;  %v612_v3 = vmul.f32 1.442695, %v553_v30 }
 0x10b   : > { %v1731_v15 = vpop.f32.mrb[15].mxu1  ;;  %v1340_v16 = vpop.eup %1339  ;;  %v626_v17 = vadd.f32 1.0, %v1338_v10  ;;  %1361 = vrcp.f32 %v644_v11  ;;  %v576_v4 = vmul.f32 1.442695, %v535_v35  ;;  %v551_v10 = vsub.f32 0.0, %v1740_v37 }
 0x10c   : > { %v1342_v25 = vpop.eup %1341  ;;  %v642_v28 = vadd.f32 1.0, %v1340_v16  ;;  %v540_v16 = vsub.f32 0.0, %v1747_v47 }
 0x10d   : > { %v1344_v31 = vpop.eup %1343  ;;  %1363 = vrcp.f32 %v626_v17  ;;  %v629_v34 = vadd.f32 1.0, %v1342_v25 }
 0x10e   : > { %v1346_v40 = vpop.eup %1345  ;;  %1365 = vrcp.f32 %v642_v28  ;;  %v720_v12 = vmul.f32 %v1344_v31, %v1633_v22  ;;  %v586_v30 = vmul.f32 1.442695, %v540_v16 }
 0x10f   : > { %v1348_v44 = vpop.eup %1347  ;;  %1367 = vrcp.f32 %v629_v34  ;;  %v736_v56 = vmul.f32 %v1346_v40, %v1636_v23 }
 0x110   : > { %v1350_v51 = vpop.eup %1349  ;;  %1369 = vpow2.f32 %v1694_v41  ;;  %v718_v18 = vmul.f32 %v1348_v44, %v1639_v26 }
 0x111   : > { %v1352_v45 = vpop.eup %1351  ;;  %1371 = vpow2.f32 %v568_v6  ;;  %v556_v6 = vsub.f32 0.0, %v1750_v50 }
 0x112   : > { %v1354_v11 = vpop.eup %1353  ;;  %v721_v57 = vmul.f32 %v1352_v45, %v1647_v32  ;;  %1373 = vpow2.f32 %v600_v42  ;;  %v734_v32 = vmul.f32 %v1350_v51, %v1642_v27 }
 0x113   : > { %v1356_v13 = vpop.eup %1355  ;;  %v737_v41 = vmul.f32 %v1354_v11, %v1650_v33  ;;  %1375 = vpow2.f32 %v578_v43  ;;  %v618_v31 = vmul.f32 1.442695, %v556_v6  ;;  %v1799_v6 = vadd.f32 %v1630_v19, %v1729_v14 }
 0x114   : > { %v1358_v17 = vpop.eup %1357  ;;  %v1107_v20 = vpack.c.bf16 %v721_v57, %v720_v12  ;;  %v719_v22 = vmul.f32 %v1356_v13, %v1655_v38  ;;  %1377 = vpow2.f32 %v610_v46  ;;  %v608_v38 = vmul.f32 1.442695, %v551_v10 }
 0x115   : > { %v1360_v23 = vpop.eup %1359  ;;  %v1147_v25 = vpack.c.bf16 %v737_v41, %v736_v56  ;;  %v735_v28 = vmul.f32 %v1358_v17, %v1658_v39  ;;  %1379 = vpow2.f32 %v574_v36  ;;  %v1786_v10 = vadd.f32 %v1630_v19, %v1718_v2 }
 0x116   : > { %v1764_v33 = vpop.eup %1361  ;;  %1179 = vst [vmem:[%s1767_s17 + $0x8] sm:$0xff] %v1107_v20   ;;  %v1102_v26 = vpack.c.bf16 %v719_v22, %v718_v18  ;;  %1381 = vpow2.f32 %v606_v60  ;;  %v724_v40 = vmul.f32 %v1360_v23, %v1665_v53  ;;  %v1782_v53 = vadd.f32 %v1630_v19, %v1716_v1 }
 0x117   : > { %v1770_v29 = vpop.eup %1363  ;;  %1187 = vst [vmem:[%s1767_s17 + $0x48] sm:$0xff] %v1147_v25   ;;  %v1142_v27 = vpack.c.bf16 %v735_v28, %v734_v32  ;;  %1383 = vpow2.f32 %v580_v61  ;;  %v1790_v56 = vadd.f32 %v1723_v8, %v1630_v19  ;;  %v1794_v1 = vadd.f32 %v1725_v9, %v1630_v19 }
 0x118   : > { %v1773_v39 = vpop.eup %1365  ;;  %1103 = vst [vmem:[%s1767_s17] sm:$0xff] %v1102_v26   ;;  %1385 = vpow2.f32 %v612_v3  ;;  %v538_v2 = vsub.f32 0.0, %v1782_v53  ;;  %v554_v18 = vsub.f32 0.0, %v1786_v10  ;;  %v1804_v20 = vadd.f32 %v1630_v19, %v1731_v15 }
 0x119   : > { %v1368_v34 = vpop.eup %1367  ;;  %1186 = vst [vmem:[%s1767_s17 + $0x40] sm:$0xff] %v1142_v27   ;;  %1387 = vpow2.f32 %v576_v4  ;;  %v541_v23 = vsub.f32 0.0, %v1790_v56  ;;  %v557_v14 = vsub.f32 0.0, %v1794_v1 }
 0x11a   : > { %v1370_v35 = vpop.eup %1369  ;;  %v725_v42 = vmul.f32 %v1368_v34, %v1679_v0  ;;  %1389 = vpow2.f32 %v608_v38  ;;  %v582_v26 = vmul.f32 1.442695, %v538_v2  ;;  %v539_v38 = vsub.f32 0.0, %v1799_v6 }
 0x11b   : > { %v1372_v43 = vpop.eup %1371  ;;  %v645_v44 = vadd.f32 1.0, %v1370_v35  ;;  %1391 = vpow2.f32 %v586_v30  ;;  %v614_v30 = vmul.f32 1.442695, %v554_v18  ;;  %v555_v19 = vsub.f32 0.0, %v1804_v20 }
 0x11c   : > { %v1374_v46 = vpop.eup %1373  ;;  %v1117_v51 = vpack.c.bf16 %v725_v42, %v724_v40  ;;  %v627_v36 = vadd.f32 1.0, %v1372_v43  ;;  %1393 = vpow2.f32 %v618_v31  ;;  %v740_v31 = vmul.f32 %v1764_v33, %v1668_v54 }
 0x11d   : > { %v1376_v60 = vpop.eup %1375  ;;  %1395 = vrcp.f32 %v645_v44  ;;  %v643_v61 = vadd.f32 1.0, %v1374_v46  ;;  %v588_v35 = vmul.f32 1.442695, %v541_v23  ;;  %v722_v42 = vmul.f32 %v1770_v29, %v1671_v58 }
 0x11e   : > { %v1378_v45 = vpop.eup %1377  ;;  %1181 = vst [vmem:[%s1767_s17 + $0x18] sm:$0xff] %v1117_v51   ;;  %1397 = vrcp.f32 %v627_v36  ;;  %v632_v3 = vadd.f32 1.0, %v1376_v60  ;;  %v738_v43 = vmul.f32 %v1773_v39, %v1674_v59  ;;  %v620_v46 = vmul.f32 1.442695, %v557_v14 }
 0x11f   : > { %v1380_v0 = vpop.eup %1379  ;;  %1399 = vrcp.f32 %v643_v61  ;;  %v648_v4 = vadd.f32 1.0, %v1378_v45  ;;  %v616_v61 = vmul.f32 1.442695, %v555_v19 }
 0x120   : > { %v1382_v11 = vpop.eup %1381  ;;  %1401 = vrcp.f32 %v632_v3  ;;  %v630_v12 = vadd.f32 1.0, %v1380_v0 }
 0x121   : > { %v1384_v57 = vpop.eup %1383  ;;  %1403 = vrcp.f32 %v648_v4  ;;  %v646_v13 = vadd.f32 1.0, %v1382_v11 }
 0x122   : > { %v1386_v41 = vpop.eup %1385  ;;  %1405 = vrcp.f32 %v630_v12  ;;  %v633_v16 = vadd.f32 1.0, %v1384_v57 }
 0x123   : > { %v1388_v17 = vpop.eup %1387  ;;  %1407 = vrcp.f32 %v646_v13  ;;  %v649_v8 = vadd.f32 1.0, %v1386_v41 }
 0x124   : > { %v1390_v9 = vpop.eup %1389  ;;  %1409 = vrcp.f32 %v633_v16  ;;  %v631_v22 = vadd.f32 1.0, %v1388_v17 }
 0x125   : > { %v1392_v32 = vpop.eup %1391  ;;  %1411 = vrcp.f32 %v649_v8  ;;  %v647_v25 = vadd.f32 1.0, %v1390_v9 }
 0x126   : > { %v1394_v28 = vpop.eup %1393  ;;  %1413 = vrcp.f32 %v631_v22  ;;  %v636_v41 = vadd.f32 1.0, %v1392_v32 }
 0x127   : > { %v1396_v27 = vpop.eup %1395  ;;  %1415 = vrcp.f32 %v647_v25  ;;  %v652_v2 = vadd.f32 1.0, %v1394_v28 }
 0x128   : > { %v1398_v15 = vpop.eup %1397  ;;  %v741_v34 = vmul.f32 %v1396_v27, %v1684_v5  ;;  %1417 = vpow2.f32 %v582_v26  ;;  %v584_v5 = vmul.f32 1.442695, %v539_v38 }
 0x129   : > { %v1400_v40 = vpop.eup %1399  ;;  %v723_v44 = vmul.f32 %v1398_v15, %v1689_v21  ;;  %1419 = vpow2.f32 %v614_v30 }
 0x12a   : > { %v1402_v51 = vpop.eup %1401  ;;  %v1157_v36 = vpack.c.bf16 %v741_v34, %v740_v31  ;;  %v739_v54 = vmul.f32 %v1400_v40, %v1692_v24  ;;  %1421 = vpow2.f32 %v588_v35 }
 0x12b   : > { %v1404_v33 = vpop.eup %1403  ;;  %v1112_v60 = vpack.c.bf16 %v723_v44, %v722_v42  ;;  %1423 = vpow2.f32 %v620_v46  ;;  %v728_v24 = vmul.f32 %v1402_v51, %v1699_v48 }
 0x12c   : > { %v1406_v45 = vpop.eup %1405  ;;  %1189 = vst [vmem:[%s1767_s17 + $0x58] sm:$0xff] %v1157_v36   ;;  %v1152_v58 = vpack.c.bf16 %v739_v54, %v738_v43  ;;  %1425 = vpow2.f32 %v584_v5  ;;  %v744_v0 = vmul.f32 %v1404_v33, %v1702_v49 }
 0x12d   : > { %v1408_v59 = vpop.eup %1407  ;;  %1180 = vst [vmem:[%s1767_s17 + $0x10] sm:$0xff] %v1112_v60   ;;  %1427 = vpow2.f32 %v616_v61  ;;  %v726_v12 = vmul.f32 %v1406_v45, %v1705_v52 }
 0x12e   : > { %v1410_v21 = vpop.eup %1409  ;;  %1188 = vst [vmem:[%s1767_s17 + $0x50] sm:$0xff] %v1152_v58   ;;  %v742_v48 = vmul.f32 %v1408_v59, %v1708_v55  ;;  %1429 = vrcp.f32 %v636_v41 }
 0x12f   : > { %v1412_v29 = vpop.eup %1411  ;;  %v729_v39 = vmul.f32 %v1410_v21, %v1711_v62  ;;  %1431 = vrcp.f32 %v652_v2 }
 0x130   : > { %v1414_v3 = vpop.eup %1413  ;;  %v745_v4 = vmul.f32 %v1412_v29, %v1714_v63 }
 0x131   : > { %v1416_v11 = vpop.eup %1415  ;;  %v1127_v57 = vpack.c.bf16 %v729_v39, %v728_v24  ;;  %v727_v13 = vmul.f32 %v1414_v3, %v1721_v7 }
 0x132   : > { %v1167_v16 = vpack.c.bf16 %v745_v4, %v744_v0  ;;  %v743_v62 = vmul.f32 %v1416_v11, %v1740_v37  ;;  %v1418_v49 = vpop.eup %1417 }
 0x133   : > { %1183 = vst [vmem:[%s1767_s17 + $0x28] sm:$0xff] %v1127_v57   ;;  %v1122_v17 = vpack.c.bf16 %v727_v13, %v726_v12  ;;  %v1420_v8 = vpop.eup %1419  ;;  %v634_v52 = vadd.f32 1.0, %v1418_v49 }
 0x134   : > { %1191 = vst [vmem:[%s1767_s17 + $0x68] sm:$0xff] %v1167_v16   ;;  %v1162_v63 = vpack.c.bf16 %v743_v62, %v742_v48  ;;  %v1422_v18 = vpop.eup %1421  ;;  %v650_v7 = vadd.f32 1.0, %v1420_v8 }
 0x135   : > { %1182 = vst [vmem:[%s1767_s17 + $0x20] sm:$0xff] %v1122_v17   ;;  %v1424_v9 = vpop.eup %1423  ;;  %1433 = vrcp.f32 %v634_v52  ;;  %v637_v55 = vadd.f32 1.0, %v1422_v18 }
 0x136   : > { %1190 = vst [vmem:[%s1767_s17 + $0x60] sm:$0xff] %v1162_v63   ;;  %v1426_v22 = vpop.eup %1425  ;;  %1435 = vrcp.f32 %v650_v7  ;;  %v653_v37 = vadd.f32 1.0, %v1424_v9 }
 0x137   : > { %v1428_v23 = vpop.eup %1427  ;;  %1437 = vrcp.f32 %v637_v55  ;;  %v635_v32 = vadd.f32 1.0, %v1426_v22 }
 0x138   : > { %1439 = vrcp.f32 %v653_v37  ;;  %v651_v25 = vadd.f32 1.0, %v1428_v23  ;;  %v1430_v14 = vpop.eup %1429 }
 0x139   : > { %1441 = vrcp.f32 %v635_v32  ;;  %v1432_v28 = vpop.eup %1431  ;;  %v732_v19 = vmul.f32 %v1430_v14, %v1747_v47 }
 0x13a   : > { %1443 = vrcp.f32 %v651_v25  ;;  %v748_v34 = vmul.f32 %v1432_v28, %v1750_v50 }
 0x13f   : > { %v1434_v26 = vpop.eup %1433 }
 0x140   : > { %v1436_v38 = vpop.eup %1435  ;;  %v730_v42 = vmul.f32 %v1434_v26, %v1782_v53 }
 0x141   : > { %v1438_v27 = vpop.eup %1437 }
 0x142   : > { %v1440_v30 = vpop.eup %1439  ;;  %v733_v15 = vmul.f32 %v1438_v27, %v1790_v56  ;;  %v746_v56 = vmul.f32 %v1436_v38, %v1786_v10 }
 0x143   : > { %v1442_v31 = vpop.eup %1441  ;;  %v749_v35 = vmul.f32 %v1440_v30, %v1794_v1 }
 0x144   : > { %v1444_v40 = vpop.eup %1443  ;;  %v1137_v43 = vpack.c.bf16 %v733_v15, %v732_v19  ;;  %v731_v47 = vmul.f32 %v1442_v31, %v1799_v6 }
 0x145   : > { %v1177_v44 = vpack.c.bf16 %v749_v35, %v748_v34  ;;  %v747_v46 = vmul.f32 %v1444_v40, %v1804_v20 }
 0x146   : > { %1185 = vst [vmem:[%s1767_s17 + $0x38] sm:$0xff] %v1137_v43   ;;  %v1132_v50 = vpack.c.bf16 %v731_v47, %v730_v42 }
 0x147   : > { %1193 = vst [vmem:[%s1767_s17 + $0x78] sm:$0xff] %v1177_v44   ;;  %v1172_v53 = vpack.c.bf16 %v747_v46, %v746_v56 }
 0x148   : > { %1184 = vst [vmem:[%s1767_s17 + $0x30] sm:$0xff] %v1132_v50  }
 0x149   : > { %1192 = vst [vmem:[%s1767_s17 + $0x70] sm:$0xff] %v1172_v53  }
 0x14a   : > { %1458 = shalt.err (!%p1455_p3)
}
 0x14b   : > { %s1459_s4 = scalar_lea.hbm %s1848_s16, 2048  ;;  %s1463_s7 = scalar_lea.hbm %s1901_s3, 4096 }
 0x14c   : > { %p1460_p4 = scmp.ne.s32.totalorder %s1848_s16, %s1459_s4  ;;  %p1464_p9 = scmp.lt.u32.totalorder %s1848_s16, %s1901_s3 }
 0x14d   : > { %p1465_p10 = scmp.lt.u32.totalorder %s1463_s7, %s1459_s4  ;;  %p1467_p12 = scmp.lt.u32.totalorder %s1459_s4, %s1848_s16 }
 0x14e   : > { %p1461_p7 = pnand %p1460_p4, %p1570_p5 }
 0x14f   : > { %p1466_p11 = por %p1465_p10, %p1464_p9 }
 0x150   : > { %p1462_p8 = pneg %p1461_p7 }
 0x151   : > { %p1468_p13 = por %p1467_p12, %p1466_p11 }
 0x153   : > { %p1469_p0 = pnand %p1468_p13, %p1462_p8 }
 0x155   : > { %1472 = shalt.err (!%p1469_p0)
}
 0x156   : > { %s1510_s10 = smov 64   ;;  %s1511_s11 = smov 4  }
 0x157   : > { %1257 = dma.vmem_to_hbm [thread:$0]  (%p1570_p5), %s1850_s20, 2048, %s1848_s16, %s1857_s26, %s1510_s10, %s1510_s10, %s1511_s11  }
 0x158 PF: > { %p1263_p1 = scmp.ge.s32.totalorder %s1507_s15, 2  ;;  %s939_s17 = sand.u32 1, %s1495_s12  }
 0x159   : > { %s940_s19 = scalar_lea.sflag [#allocation3], %s939_s17 }
 0x15a   : > { %p1260_p2 = pnand %p1263_p1, %p1574_p6 }
 0x15c   : > { %1490 = dma.done.wait (!%p1260_p2), %s940_s19, 2048  }
 0x15d   : > { %1492 = vsyncadd (!%p1260_p2), %s940_s19, 4294965248  ;;  %p13_p3 = scmp.ge.s32.totalorder %s1557_s18, 4   ;;  %s1904_s12 = smov %s1499_s13 }
 0x15e   : > { %s1905_s13 = smov %s1503_s14  ;;  %s1906_s14 = smov %s1568_s21 }
 0x15f   : > { %s1907_s15 = smov %s1557_s18  ;;  %15 = sbr.rel (!%p13_p3) target bundleno = 3 (0x3), region = 67 }
 0x166   :  { %945 = vsyncpa [#allocation3], 1 }
 0x167   :  { %947 = vsyncpa [#allocation3 + $0x1], 1 }

</bundles_post_ra>
